<compile_context>
chip_gen: v6e
topology: v6e:2x2x1
jax: 0.10.0
libtpu: 0.0.40
codegen_flags: <defaults>
</compile_context>

<pallas_src>
import functools

import jax
import jax.numpy as jnp
from jax import lax
from jax.experimental import pallas as pl
from jax.experimental.pallas import tpu as pltpu

_VMEM_BUDGET = 28 * 1024 * 1024      # accounted VMEM per pallas_call
_VMEM_LIMIT = 40 * 1024 * 1024       # scoped-VMEM limit (head-room under v7x's 64 MiB)
_MIN_ROW_MAJOR_C = 32                # below this class count, use the lane-dense path


def _round_down(x: int, m: int) -> int:
    return (x // m) * m


def _round_up(x: int, m: int) -> int:
    return -(-x // m) * m


def _acc_kernel_row_major(y_pred_ref, y_true_ref, out_ref, *, n_total):
    """Count correct predictions in a (TILE_N, C) row-major logit tile."""
    i = pl.program_id(0)
    preds = y_pred_ref[...]                                   # (T, C), native dtype
    t, c = preds.shape
    labels = y_true_ref[...]                                  # (T, 1) int32

    # First-occurrence argmax over the class (lane) axis — matches
    # torch.argmax tie-breaking exactly; computed in the native dtype.
    row_max = jnp.max(preds, axis=1, keepdims=True)           # (T, 1)
    cls_idx = lax.broadcasted_iota(jnp.int32, (t, c), 1)      # (T, C)
    class_pred = jnp.min(
        jnp.where(preds == row_max, cls_idx, jnp.int32(c)),
        axis=1, keepdims=True)                                # (T, 1) int32

    # Mask out padded rows of the last (partial) tile.
    row = i * t + lax.broadcasted_iota(jnp.int32, (t, 1), 0)
    valid = row < n_total
    correct = (valid & (class_pred == labels)).astype(jnp.int32)

    out_ref[...] = jnp.broadcast_to(jnp.sum(correct), out_ref.shape)


def _acc_kernel_lane_dense(y_pred_ref, y_true_ref, out_ref, *, n_total):
    """Count correct predictions in a (C, TILE_N) lane-dense logit tile."""
    i = pl.program_id(0)
    preds = y_pred_ref[...]                                   # (C, T), native dtype
    c, t = preds.shape
    labels = y_true_ref[...]                                  # (1, T) int32

    col_max = jnp.max(preds, axis=0, keepdims=True)           # (1, T)
    cls_idx = lax.broadcasted_iota(jnp.int32, (c, t), 0)      # (C, T)
    class_pred = jnp.min(
        jnp.where(preds == col_max, cls_idx, jnp.int32(c)),
        axis=0, keepdims=True)                                # (1, T) int32

    col = i * t + lax.broadcasted_iota(jnp.int32, (1, t), 1)
    valid = col < n_total
    correct = (valid & (class_pred == labels)).astype(jnp.int32)

    out_ref[...] = jnp.broadcast_to(jnp.sum(correct), out_ref.shape)


def _pick_tile_rows(n: int, c: int, itemsize: int) -> int:
    """Row-major path: batch rows per tile, budgeted on lane-padded VMEM."""
    lane_c = _round_up(c, 128)                    # lane-padded class width in VMEM
    bytes_per_row = (2 * lane_c * itemsize        # double-buffered logits block
                     + 2 * 128 * 4                # double-buffered labels (lane-padded)
                     + 4 * lane_c * 4)            # argmax temporaries (iota/eq/where/max)
    t = max(int(_VMEM_BUDGET // bytes_per_row), 8)
    if t >= n:
        return n
    return _round_down(t, 128) if t >= 128 else _round_down(t, 8)


def _pick_tile_cols(n: int, c: int, itemsize: int) -> int:
    """Lane-dense path: batch lanes per tile, budgeted on sublane-padded VMEM."""
    sub_c = _round_up(c, 8)                       # sublane-padded class height in VMEM
    bytes_per_col = (2 * sub_c * itemsize         # double-buffered logits block
                     + 3 * sub_c * 4              # argmax temporaries
                     + 2 * 8 * 4                  # double-buffered labels
                     + 6 * 8 * 4)                 # (1, T) intermediates
    t = max(int(_VMEM_BUDGET // bytes_per_col), 128)
    if t >= n:
        return n
    return _round_down(t, 128)


def accuracy(y_pred: jax.Array, y_true: jax.Array, *, tile: int | None = None) -> jax.Array:
    """Pallas-backed accuracy: scalar f32 = mean(argmax(y_pred, axis=1) == y_true)."""
    n, c = y_pred.shape
    itemsize = jnp.dtype(y_pred.dtype).itemsize
    labels = y_true.astype(jnp.int32)

    compiler_params = pltpu.CompilerParams(
        # Every grid step writes its own partial-count block, so the batch axis
        # is fully parallel (v7x shards the tiles across both TensorCores).
        dimension_semantics=("parallel",),
        vmem_limit_bytes=_VMEM_LIMIT,
    )

    if c >= _MIN_ROW_MAJOR_C:
        # Row-major path: no transpose, minimum HBM traffic.
        tile_n = tile if tile is not None else _pick_tile_rows(n, c, itemsize)
        tile_n = min(tile_n, n)
        if tile_n != n and tile_n % 8 != 0:
            raise ValueError("tile must be a multiple of 8 (or >= N)")
        num_tiles = pl.cdiv(n, tile_n)
        out = pl.pallas_call(
            functools.partial(_acc_kernel_row_major, n_total=n),
            out_shape=jax.ShapeDtypeStruct((num_tiles, 8, 128), jnp.int32),
            grid=(num_tiles,),
            in_specs=[
                pl.BlockSpec((tile_n, c), lambda i: (i, 0)),      # logit rows
                pl.BlockSpec((tile_n, 1), lambda i: (i, 0)),      # labels
            ],
            out_specs=pl.BlockSpec((1, 8, 128), lambda i: (i, 0, 0)),
            compiler_params=compiler_params,
        )(y_pred, labels.reshape(n, 1))
    else:
        # Tiny-C path: lane-dense layout (classes on sublanes, batch on lanes)
        # so VPU/XLU work per sample stays small; accepts one transpose pass.
        # TODO(synk): try pltpu.CompilerParams(allow_input_fusion=[0]) so XLA can
        # fuse this transpose into the pallas_call input instead of a full HBM pass.
        tile_n = tile if tile is not None else _pick_tile_cols(n, c, itemsize)
        tile_n = min(tile_n, n)
        if tile_n != n and tile_n % 128 != 0:
            raise ValueError("tile must be a multiple of 128 (or >= N)")
        num_tiles = pl.cdiv(n, tile_n)
        out = pl.pallas_call(
            functools.partial(_acc_kernel_lane_dense, n_total=n),
            out_shape=jax.ShapeDtypeStruct((num_tiles, 8, 128), jnp.int32),
            grid=(num_tiles,),
            in_specs=[
                pl.BlockSpec((c, tile_n), lambda i: (0, i)),      # (C, N) logit tile
                pl.BlockSpec((1, tile_n), lambda i: (0, i)),      # (1, N) labels tile
            ],
            out_specs=pl.BlockSpec((1, 8, 128), lambda i: (i, 0, 0)),
            compiler_params=compiler_params,
        )(jnp.transpose(y_pred), labels.reshape(1, n))

    # Exact int32 accumulation of the per-tile counts; single divide at the end.
    correct = jnp.sum(out[:, 0, 0])
    return correct.astype(jnp.float32) / jnp.float32(n)


if __name__ == "__main__":
    key = jax.random.PRNGKey(0)
    k1, k2, k3, k4, k5, k6 = jax.random.split(key, 6)

    # 1) Tiny-C path (lane-dense), single tile.  Batch of 8 samples, 10 classes.
    N, C = 8, 10
    y_pred = jax.random.normal(k1, (N, C), dtype=jnp.float32)
    y_true = jax.random.randint(k2, (N,), 0, C, dtype=jnp.int32)
    acc = jax.block_until_ready(accuracy(y_pred, y_true))
    ref = jnp.mean((jnp.argmax(y_pred, axis=1) == y_true).astype(jnp.float32))
    assert jnp.allclose(acc, ref), (acc, ref)

    # 2) Tiny-C path, multi-tile + partial last tile, native bf16 logits.
    N2, C2 = 300, 10
    y_pred2 = jax.random.normal(k3, (N2, C2), dtype=jnp.float32).astype(jnp.bfloat16)
    y_true2 = jax.random.randint(k4, (N2,), 0, C2, dtype=jnp.int32)
    acc2 = jax.block_until_ready(accuracy(y_pred2, y_true2, tile=128))
    ref2 = jnp.mean(
        (jnp.argmax(y_pred2.astype(jnp.float32), axis=1) == y_true2).astype(jnp.float32))
    assert jnp.allclose(acc2, ref2), (acc2, ref2)

    # 3) Wide-C path (row-major, no transpose), multi-tile + partial last tile.
    N3, C3 = 200, 160
    y_pred3 = jax.random.normal(k5, (N3, C3), dtype=jnp.float32)
    y_true3 = jax.random.randint(k6, (N3,), 0, C3, dtype=jnp.int32)
    acc3 = jax.block_until_ready(accuracy(y_pred3, y_true3, tile=64))
    ref3 = jnp.mean((jnp.argmax(y_pred3, axis=1) == y_true3).astype(jnp.float32))
    assert jnp.allclose(acc3, ref3), (acc3, ref3)

    # 3b) Wide-C path with the default (budget-driven) single tile.
    acc3b = jax.block_until_ready(accuracy(y_pred3, y_true3))
    assert jnp.allclose(acc3b, ref3), (acc3b, ref3)

    print("KERNEL_OK")
</pallas_src>

<mosaic_0001>
module attributes {stable_mosaic.version = 11 : i64} {
  func.func @_acc_kernel_lane_dense(%arg0: i32, %arg1: memref<10x8xf32, #tpu.memory_space<vmem>>, %arg2: memref<1x8xi32, #tpu.memory_space<vmem>>, %arg3: memref<1x8x128xi32, #tpu.memory_space<vmem>>) attributes {dimension_semantics = [#tpu.dimension_semantics<parallel>], iteration_bounds = array<i64: 1>, scalar_prefetch = 0 : i64, scratch_operands = 0 : i64, tpu.core_type = #tpu.core_type<tc>, window_params = [{transform_indices = @transform_0, window_bounds = array<i64: 10, 8>}, {transform_indices = @transform_1, window_bounds = array<i64: 1, 8>}, {transform_indices = @transform_2, window_bounds = array<i64: 1, 8, 128>}]} {
    %c0 = arith.constant 0 : index
    %c0_0 = arith.constant 0 : index
    %0 = vector.load %arg1[%c0, %c0_0] : memref<10x8xf32, #tpu.memory_space<vmem>>, vector<10x8xf32>
    %c0_1 = arith.constant 0 : index
    %c0_2 = arith.constant 0 : index
    %1 = vector.load %arg2[%c0_1, %c0_2] : memref<1x8xi32, #tpu.memory_space<vmem>>, vector<1x8xi32>
    %cst = arith.constant dense<0xFF800000> : vector<8xf32>
    %2 = vector.multi_reduction <maximumf>, %0, %cst [0] : vector<10x8xf32> to vector<8xf32>
    %3 = vector.shape_cast %2 : vector<8xf32> to vector<1x8xf32>
    %4 = tpu.iota {dimensions = array<i32: 0>} : vector<10x8xi32>
    %5 = vector.broadcast %3 : vector<1x8xf32> to vector<10x8xf32>
    %6 = arith.cmpf oeq, %0, %5 : vector<10x8xf32>
    %c10_i32 = arith.constant 10 : i32
    %7 = vector.broadcast %c10_i32 : i32 to vector<10x8xi32>
    %8 = arith.select %6, %4, %7 : vector<10x8xi1>, vector<10x8xi32>
    %cst_3 = arith.constant dense<2147483647> : vector<8xi32>
    %9 = vector.multi_reduction <minsi>, %8, %cst_3 [0] : vector<10x8xi32> to vector<8xi32>
    %10 = vector.shape_cast %9 : vector<8xi32> to vector<1x8xi32>
    %c8_i32 = arith.constant 8 : i32
    %11 = arith.muli %arg0, %c8_i32 : i32
    %12 = tpu.iota {dimensions = array<i32: 1>} : vector<1x8xi32>
    %13 = vector.broadcast %11 : i32 to vector<1x8xi32>
    %14 = arith.addi %13, %12 : vector<1x8xi32>
    %c8_i32_4 = arith.constant 8 : i32
    %15 = vector.broadcast %c8_i32_4 : i32 to vector<1x8xi32>
    %16 = arith.cmpi slt, %14, %15 : vector<1x8xi32>
    %17 = arith.cmpi eq, %10, %1 : vector<1x8xi32>
    %18 = arith.andi %16, %17 : vector<1x8xi1>
    %19 = arith.extui %18 : vector<1x8xi1> to vector<1x8xi32>
    %20 = vector.shape_cast %19 : vector<1x8xi32> to vector<1x1x8xi32>
    %cst_5 = arith.constant dense<0> : vector<1xi32>
    %21 = vector.multi_reduction <add>, %20, %cst_5 [1, 2] : vector<1x1x8xi32> to vector<1xi32>
    %22 = vector.shape_cast %21 : vector<1xi32> to vector<1x1x1xi32>
    %23 = vector.extract %22[0, 0, 0] : i32 from vector<1x1x1xi32>
    %24 = vector.broadcast %23 : i32 to vector<1x8x128xi32>
    %c0_6 = arith.constant 0 : index
    %c0_7 = arith.constant 0 : index
    %c0_8 = arith.constant 0 : index
    %25 = vector.load %arg3[%c0_6, %c0_7, %c0_8] : memref<1x8x128xi32, #tpu.memory_space<vmem>>, vector<1x8x128xi32>
    tpu.vector_store %arg3[%c0_6, %c0_7, %c0_8], %24 {strides = array<i32>} : memref<1x8x128xi32, #tpu.memory_space<vmem>>, vector<1x8x128xi32>,
    return
  }
  func.func @transform_0(%arg0: i32) -> (i32, i32) {
    %c0_i32 = arith.constant 0 : i32
    %c0_i32_0 = arith.constant 0 : i32
    return %c0_i32, %arg0 : i32, i32
  }
  func.func @transform_1(%arg0: i32) -> (i32, i32) {
    %c0_i32 = arith.constant 0 : i32
    %c0_i32_0 = arith.constant 0 : i32
    return %c0_i32, %arg0 : i32, i32
  }
  func.func @transform_2(%arg0: i32) -> (i32, i32, i32) {
    %c0_i32 = arith.constant 0 : i32
    %c0_i32_0 = arith.constant 0 : i32
    %c0_i32_1 = arith.constant 0 : i32
    return %arg0, %c0_i32, %c0_i32_0 : i32, i32, i32
  }
}

</mosaic_0001>

<bundles_post_ra>
// kernel: tpu_custom_call.1
= control target key start
LH: loop header
LB: loop body
LE: loop exit
PB: predicated region body
PF: predicated region fallthrough
CT: control target
= control target key end

     0   :  { %vm15_vm0 = vcmask 64512   ;;  %vm17_vm1 = vcmask 58368   ;;  %s151_s0 = inlined_call_operand.vmem [shape: f32[10,8], index: 0, kind: input, shape index: {}]   ;;  %s152_s1 = inlined_call_operand.vmem [shape: s32[1,8], index: 1, kind: input, shape index: {}]   ;;  %s153_s2 = inlined_call_operand.hbm [shape: s32[1,8,128], index: 2, kind: output, shape index: {}]  }
   0x1   :  { %v12_v0 = vld [vmem:[%s151_s0] sm:$0xff]  ;;  %v13_v1 = vld [vmem:[%s151_s0 + $0x8] sm:$0x3] }
   0x2   :  { %v16_v2 = vsel %vm15_vm0, %v12_v0, -inf }
   0x3   :  { %7 = vsyncpa [#allocation3], 0  ;;  %v18_v3 = vsel %vm17_vm1, %v13_v1, -inf  ;;  %v26_v6 = vlaneseq  ;;  %v14_v25 = vld [vmem:[%s152_s1] sm:$0x1]  ;;  %vm55_vm10 = vcmask 57344  }
   0x4   :  { %v19_v4 = vmax.f32 %v16_v2, %v18_v3  ;;  %v118_v27 = vmov 0   ;;  %s119_s1 = smov [#allocation2]  }
   0x5   :  { %v27_v9 = vshrl.u32 %v26_v6, 7  ;;  %v48_v22 = vand.u32 127, %v26_v6  ;;  %s84_s14 = sshll.u32 %s119_s1, 4  ;;  %s85_s14 = int_to_ptr.vmem [resolvable:$true] %s84_s14 }
   0x6   :  { %v20_v5 = vrot.slane %v19_v4, 4  ;;  %s96_s16 = scalar_lea.vmem %s85_s14, 128  ;;  %p101_p1 = scmp.lt.s32.totalorder %s85_s14, %s85_s14 }
   0x7   :  { %v28_v12 = vadd.s32 8, %v27_v9  ;;  %vm51_vm8 = vcmp.lt.s32.totalorder %v48_v22, 8  ;;  %p97_p0 = scmp.ne.s32.totalorder %s85_s14, %s96_s16  ;;  %p102_p2 = scmp.lt.s32.totalorder %s96_s16, %s96_s16 }
   0x8   :  { %v21_v7 = vmax.f32 %v19_v4, %v20_v5 }
   0x9   :  { %p103_p3 = por %p102_p2, %p101_p1 }
   0xa   :  { %v22_v8 = vrot.slane %v21_v7, 2 }
   0xb   :  { %p104_p4 = pnand %p103_p3, %p97_p0 }
   0xc   :  { %v23_v10 = vmax.f32 %v21_v7, %v22_v8 }
   0xe   :  { %v24_v11 = vrot.slane %v23_v10, 1 }
  0x10   :  { %v25_v13 = vmax.f32 %v23_v10, %v24_v11 }
  0x12   :  { %vm29_vm2 = vcmp.eq.f32.partialorder %v12_v0, %v25_v13  ;;  %vm30_vm3 = vcmp.eq.f32.partialorder %v13_v1, %v25_v13 }
  0x13   :  { %v31_v14 = vsel %vm29_vm2, %v27_v9, 10  ;;  %v32_v15 = vsel %vm30_vm3, %v28_v12, 10 }
  0x14   :  { %v33_v16 = vsel %vm15_vm0, %v31_v14, 2147483647  ;;  %v34_v17 = vsel %vm17_vm1, %v32_v15, 2147483647 }
  0x15   :  { %vm35_vm4 = vcmp.lt.s32.totalorder %v33_v16, %v34_v17 }
  0x16   :  { %v36_v18 = vsel %vm35_vm4, %v33_v16, %v34_v17 }
  0x17   :  { %v37_v19 = vrot.slane %v36_v18, 4 }
  0x19   :  { %vm38_vm5 = vcmp.lt.s32.totalorder %v36_v18, %v37_v19 }
  0x1a   :  { %v39_v20 = vsel %vm38_vm5, %v36_v18, %v37_v19 }
  0x1b   :  { %v40_v21 = vrot.slane %v39_v20, 2 }
  0x1d   :  { %vm41_vm6 = vcmp.lt.s32.totalorder %v39_v20, %v40_v21 }
  0x1e   :  { %v42_v23 = vsel %vm41_vm6, %v39_v20, %v40_v21 }
  0x1f   :  { %v43_v24 = vrot.slane %v42_v23, 1 }
  0x21   :  { %vm44_vm7 = vcmp.lt.s32.totalorder %v42_v23, %v43_v24 }
  0x22   :  { %v45_v26 = vsel %vm44_vm7, %v42_v23, %v43_v24 }
  0x23   :  { %vm52_vm9 = vcmp.eq.s32.totalorder %v45_v26, %v14_v25 }
  0x24   :  { %vm53_vm11 = vmand %vm51_vm8, %vm52_vm9 }
  0x25   :  { %v54_v28 = vsel %vm53_vm11, 1, %v118_v27 }
  0x26   :  { %v56_v29 = vsel %vm55_vm10, %v54_v28, 0 }
  0x27   :  { %v58_v30 = vshrl.u32 %v56_v29, 16  ;;  %v57_v31 = vand.u32 65535, %v56_v29 }
  0x29   :  { %v60_v32 = vcvt.s32.f32 %v58_v30  ;;  %v59_v33 = vcvt.s32.f32 %v57_v31 }
  0x2b   :  { %63 = vadd.xlane.f32.xlu0 %v60_v32 }
  0x2f   :  { %61 = vadd.xlane.f32.xlu0 %v59_v33 }
  0xb4   :  { %v64_v34 = vpop.xlane.xlu0 %63 }
  0xb5   :  { %v66_v35 = vcvt.f32.s32 %v64_v34 }
  0xb7   :  { %v67_v37 = vshll.u32 %v66_v35, 16 }
  0xb8   :  { %v62_v36 = vpop.xlane.xlu0 %61 }
  0xb9   :  { %v65_v38 = vcvt.f32.s32 %v62_v36 }
  0xbb   :  { %v68_v39 = vadd.s32 %v67_v37, %v65_v38 }
  0xbd   :  { %v69_v40 = vrot.slane %v68_v39, 4 }
  0xbf   :  { %v70_v41 = vadd.s32 %v69_v40, %v68_v39 }
  0xc1   :  { %v71_v42 = vrot.slane %v70_v41, 2 }
  0xc3   :  { %v72_v43 = vadd.s32 %v71_v42, %v70_v41 }
  0xc5   :  { %v73_v44 = vrot.slane %v72_v43, 1 }
  0xc7   :  { %v74_v45 = vadd.s32 %v73_v44, %v72_v43 }
  0xc9   :  { %92 = vpush %v74_v45 }
  0xfa   :  { %s93_s15 = spop %92 }
  0xfb   :  { %v76_v46 = vstv %s93_s15 }
  0xfc   :  { %77 = vst [vmem:[#allocation2] sm:$0xff] %v76_v46 }
  0xfd   :  { %107 = shalt.err (!%p104_p4)
}
  0xfe   :  { %87 = dma.vmem_to_hbm [thread:$0]  %s85_s14, 128, %s153_s2, [#allocation3]  }
  0xff   :  { %116 = dma.done.wait [#allocation3], 128  }
 0x100   :  { %117 = vsyncadd [#allocation3], 4294967168 }
 0x101   :  { %91 = vsyncpa [#allocation3], 1 }

</bundles_post_ra>
